<compile_context>
chip_gen: v7x
topology: tpu7x:2x2x1
jax: 0.10.0
libtpu: 0.0.40
codegen_flags: <defaults>
</compile_context>

<pallas_src>
import functools

import jax
import jax.numpy as jnp
from jax.experimental import pallas as pl
from jax.experimental.pallas import tpu as pltpu


# ---------------------------------------------------------------------------
# Kernel
# ---------------------------------------------------------------------------
def _h_sigmoid_kernel(hmax_ref, x_ref, o_ref, *, compute_dtype):
    # y = clip(x + 3, 0, 6) * (h_max / 6)
    x = x_ref[...].astype(compute_dtype)
    scale = (hmax_ref[0] * (1.0 / 6.0)).astype(compute_dtype)
    three = jnp.asarray(3.0, compute_dtype)
    zero = jnp.asarray(0.0, compute_dtype)
    six = jnp.asarray(6.0, compute_dtype)
    y = jnp.clip(x + three, zero, six) * scale
    o_ref[...] = y.astype(o_ref.dtype)


# ---------------------------------------------------------------------------
# XLA fallback (non-float dtypes / element counts not divisible by 128)
# ---------------------------------------------------------------------------
def _h_sigmoid_xla(x, h_max):
    # h_max kept as a (possibly traced) value -> no recompile per h_max.
    hm = jnp.asarray(h_max, jnp.float32)
    xf = x.astype(jnp.float32)
    return (jnp.clip(xf + 3.0, 0.0, 6.0) * (hm * (1.0 / 6.0))).astype(x.dtype)


# ---------------------------------------------------------------------------
# Hardware-generation detection (tile sizing + bf16-native compute)
# ---------------------------------------------------------------------------
def _device_kind() -> str:
    try:
        return jax.devices()[0].device_kind.lower()
    except Exception:  # pragma: no cover - non-TPU / query failure
        return ""


def _gen_config():
    kind = _device_kind()
    is_v6_plus = ("v6" in kind) or ("v7" in kind) or ("tpu7" in kind)
    # 4 MiB tiles on v6e/v7x (16 MiB double-buffered < 32 MiB scoped default),
    # 2 MiB on v5e/older (16 MiB scoped default).
    tile_bytes = (4 * 1024 * 1024) if is_v6_plus else (2 * 1024 * 1024)
    bf16_native = is_v6_plus  # v5-generation VPU has no native bf16
    return tile_bytes, bf16_native


# ---------------------------------------------------------------------------
# Wrapper
# ---------------------------------------------------------------------------
def h_sigmoid(x, h_max: float = 1.0, *, tile_bytes: int | None = None):
    """Hard sigmoid, elementwise, any shape (NCHW conv activations typical)."""
    orig_shape = x.shape
    dtype = x.dtype
    total = x.size
    itemsize = jnp.dtype(dtype).itemsize

    default_tile_bytes, bf16_native = _gen_config()
    if tile_bytes is None:
        tile_bytes = default_tile_bytes

    # Non-float dtypes: defined behaviour only for floating activations
    # (int8 truncation of a [0, h_max] output is meaningless) -> fused XLA.
    # TODO(synk): define an explicit quantization if int8/fp8 activations are
    # ever required here.
    if total == 0 or not jnp.issubdtype(dtype, jnp.floating):
        return _h_sigmoid_xla(x, h_max)

    # Widest lane-dense column count that divides the element count exactly
    # (free row-major reshape, no padding copies).
    cols = None
    for c in (1024, 512, 256, 128):
        if total % c == 0:
            cols = c
            break
    if cols is None:
        # A pad copy would cost more HBM traffic than the fused op itself.
        return _h_sigmoid_xla(x, h_max)

    rows = total // cols
    x2d = x.reshape(rows, cols)  # contiguous reshape: no HBM copy

    # dtype-native sublane multiple: 8 (32-bit), 16 (16-bit), 32 (8-bit)
    sublane = {4: 8, 2: 16, 1: 32}.get(itemsize, 8)

    # Tile rows sized so each grid step moves ~tile_bytes.
    tr = max(sublane, (tile_bytes // (cols * itemsize)) // sublane * sublane)
    if tr >= rows:
        # Whole tensor fits one tile.  On multi-TC parts (v7x) still split
        # largish tensors into >= 2 blocks so both cores' DMA engines stream;
        # tiny tensors keep a single full-extent block (grid overhead wins).
        if rows >= 2 * sublane and rows * cols * itemsize >= (1 << 20):
            half = -(-(-(-rows // 2)) // sublane) * sublane  # round_up(ceil(r/2), sublane)
            tr = min(rows, max(sublane, half))
        else:
            tr = rows
    grid = (pl.cdiv(rows, tr),)

    # bf16 stays native on v6e/v7x; everything else computes in f32.
    if dtype == jnp.bfloat16 and bf16_native:
        compute_dtype = jnp.bfloat16
    elif dtype == jnp.float32:
        compute_dtype = jnp.float32
    else:
        compute_dtype = jnp.float32

    hmax_arr = jnp.asarray(jnp.reshape(jnp.asarray(h_max, jnp.float32), (1,)))

    kernel = functools.partial(_h_sigmoid_kernel, compute_dtype=compute_dtype)

    grid_spec = pltpu.PrefetchScalarGridSpec(
        num_scalar_prefetch=1,  # h_max lands in SMEM once, before the grid
        grid=grid,
        in_specs=[pl.BlockSpec((tr, cols), lambda i, hmax: (i, 0))],
        out_specs=pl.BlockSpec((tr, cols), lambda i, hmax: (i, 0)),
    )

    out2d = pl.pallas_call(
        kernel,
        out_shape=jax.ShapeDtypeStruct((rows, cols), dtype),
        grid_spec=grid_spec,
        compiler_params=pltpu.CompilerParams(
            # "parallel" lets the grid shard across v7x's 2 TensorCores.
            dimension_semantics=("parallel",),
        ),
        cost_estimate=pl.CostEstimate(
            flops=4 * int(total),
            transcendentals=0,
            bytes_accessed=2 * int(total) * int(itemsize),
        ),
    )(hmax_arr, x2d)

    return out2d.reshape(orig_shape)


# ---------------------------------------------------------------------------
# Self-test
# ---------------------------------------------------------------------------
if __name__ == "__main__":
    key = jax.random.PRNGKey(0)

    def ref(x, h_max):
        xf = x.astype(jnp.float32)
        return (jnp.clip(xf + 3.0, 0.0, 6.0) * (h_max / 6.0)).astype(x.dtype)

    # 1) Small NCHW activation, f32 (single full-extent block).
    x = jax.random.normal(key, (2, 4, 16, 16), dtype=jnp.float32) * 4.0
    y = jax.block_until_ready(h_sigmoid(x, h_max=1.0))
    assert y.shape == x.shape and y.dtype == x.dtype
    assert jnp.max(jnp.abs(y - ref(x, 1.0))) < 1e-6

    # 2) Shape that forces a multi-block grid with a ragged last block
    #    (rows=15, tile rows=8) to exercise the pipelined path.
    k2 = jax.random.split(key)[0]
    x2 = jax.random.normal(k2, (1, 3, 64, 40), dtype=jnp.float32) * 4.0
    y2 = jax.block_until_ready(h_sigmoid(x2, h_max=2.0, tile_bytes=16 * 1024))
    assert jnp.max(jnp.abs(y2 - ref(x2, 2.0))) < 1e-6

    # 3) bf16 activation (16-sublane tile; native bf16 math on v6e/v7x).
    x3 = (jax.random.normal(key, (2, 4, 16, 16), dtype=jnp.float32) * 4.0).astype(jnp.bfloat16)
    y3 = jax.block_until_ready(h_sigmoid(x3, h_max=1.0))
    y3_ref = ref(x3, 1.0)
    assert y3.dtype == jnp.bfloat16
    assert jnp.max(jnp.abs(y3.astype(jnp.float32) - y3_ref.astype(jnp.float32))) < 2e-2

    # 4) Element count not a multiple of 128 -> fused XLA fallback path.
    x4 = jax.random.normal(key, (2, 3, 5, 7), dtype=jnp.float32) * 4.0
    y4 = jax.block_until_ready(h_sigmoid(x4, h_max=1.0))
    assert jnp.max(jnp.abs(y4 - ref(x4, 1.0))) < 1e-6

    print("KERNEL_OK")
</pallas_src>

<mosaic_0001>
module attributes {stable_mosaic.version = 11 : i64} {
  func.func @_h_sigmoid_kernel(%arg0: i32, %arg1: memref<1xf32, #tpu.memory_space<smem>>, %arg2: memref<2x1024xf32, #tpu.memory_space<vmem>>, %arg3: memref<2x1024xf32, #tpu.memory_space<vmem>>) attributes {dimension_semantics = [#tpu.dimension_semantics<parallel>], iteration_bounds = array<i64: 1>, scalar_prefetch = 1 : i64, scratch_operands = 0 : i64, tpu.core_type = #tpu.core_type<tc>, window_params = [{transform_indices = @transform_0, window_bounds = array<i64: 2, 1024>}, {transform_indices = @transform_1, window_bounds = array<i64: 2, 1024>}]} {
    %c0 = arith.constant 0 : index
    %c0_0 = arith.constant 0 : index
    %0 = vector.load %arg2[%c0, %c0_0] : memref<2x1024xf32, #tpu.memory_space<vmem>>, vector<2x1024xf32>
    %c0_1 = arith.constant 0 : index
    %1 = memref.load %arg1[%c0_1] : memref<1xf32, #tpu.memory_space<smem>>
    %cst = arith.constant 0.166666672 : f32
    %2 = arith.mulf %1, %cst : f32
    %cst_2 = arith.constant 3.000000e+00 : f32
    %3 = vector.broadcast %cst_2 : f32 to vector<2x1024xf32>
    %4 = arith.addf %0, %3 : vector<2x1024xf32>
    %cst_3 = arith.constant 0.000000e+00 : f32
    %cst_4 = arith.constant 6.000000e+00 : f32
    %5 = vector.broadcast %cst_3 : f32 to vector<2x1024xf32>
    %6 = arith.maximumf %5, %4 : vector<2x1024xf32>
    %7 = vector.broadcast %cst_4 : f32 to vector<2x1024xf32>
    %8 = arith.minimumf %7, %6 : vector<2x1024xf32>
    %9 = vector.broadcast %2 : f32 to vector<2x1024xf32>
    %10 = arith.mulf %8, %9 : vector<2x1024xf32>
    %c0_5 = arith.constant 0 : index
    %c0_6 = arith.constant 0 : index
    %11 = vector.load %arg3[%c0_5, %c0_6] : memref<2x1024xf32, #tpu.memory_space<vmem>>, vector<2x1024xf32>
    tpu.vector_store %arg3[%c0_5, %c0_6], %10 {strides = array<i32>} : memref<2x1024xf32, #tpu.memory_space<vmem>>, vector<2x1024xf32>,
    return
  }
  func.func @transform_0(%arg0: i32, %arg1: memref<1xf32, #tpu.memory_space<smem>>) -> (i32, i32) {
    %c0_i32 = arith.constant 0 : i32
    %c0_i32_0 = arith.constant 0 : i32
    return %arg0, %c0_i32 : i32, i32
  }
  func.func @transform_1(%arg0: i32, %arg1: memref<1xf32, #tpu.memory_space<smem>>) -> (i32, i32) {
    %c0_i32 = arith.constant 0 : i32
    %c0_i32_0 = arith.constant 0 : i32
    return %arg0, %c0_i32 : i32, i32
  }
}

</mosaic_0001>

<bundles_post_ra>
// kernel: tpu_custom_call.1
= control target key start
LH: loop header
LB: loop body
LE: loop exit
PB: predicated region body
PF: predicated region fallthrough
CT: control target
= control target key end

     0   :  { %8 = vsyncpa [#allocation5], 0  ;;  %s147_s0 = inlined_call_operand.<no memory space> [shape: f32[1], index: 0, kind: input, shape index: {}]   ;;  %s148_s1 = inlined_call_operand.hbm [shape: f32[2,1024], index: 1, kind: input, shape index: {}]   ;;  %s149_s2 = inlined_call_operand.hbm [shape: f32[2,1024], index: 2, kind: output, shape index: {}]  }
   0x1   :  { %9 = vsyncpa [#allocation6], 0  ;;  %s103_s9 = smov [#allocation4]   ;;  %s55_s13 = scalar_lea.hbm %s148_s1, 256 }
   0x2   :  { %s16_s10 = sshll.u32 %s103_s9, 4  ;;  %p56_p0 = scmp.ne.s32.totalorder %s148_s1, %s55_s13  ;;  %s17_s10 = int_to_ptr.vmem [resolvable:$true] %s16_s10 }
   0x3   :  { %p59_p1 = scmp.lt.u32.totalorder %s55_s13, %s148_s1 }
   0x5   :  { %p61_p2 = pnand %p59_p1, %p56_p0 }
   0x7   :  { %64 = shalt.err (!%p61_p2)
}
   0x8   :  { %s65_s18 = scalar_lea.vmem %s17_s10, 256  ;;  %p70_p4 = scmp.lt.s32.totalorder %s17_s10, %s17_s10 }
   0x9   :  { %p66_p3 = scmp.ne.s32.totalorder %s17_s10, %s65_s18  ;;  %p71_p5 = scmp.lt.s32.totalorder %s65_s18, %s65_s18 }
   0xb   :  { %p72_p6 = por %p71_p5, %p70_p4 }
   0xd   :  { %p73_p7 = pnand %p72_p6, %p66_p3 }
   0xf   :  { %76 = shalt.err (!%p73_p7)
}
  0x10   :  { %19 = dma.hbm_to_vmem [thread:$0]  %s148_s1, 256, %s17_s10, [#allocation5]  }
  0x11   :  { %99 = dma.done.wait [#allocation5], 256  }
  0x12   :  { %100 = vsyncadd [#allocation5], 4294967040  ;;  %v23_v0 = vld [vmem:[#allocation4] sm:$0xff]  ;;  %s26_s23 = smul.f32 0.16666667, %s147_s0  ;;  %v24_v1 = vld [vmem:[#allocation4 + $0x8] sm:$0xff] }
  0x13   :  { %v27_v2 = vadd.f32 3.0, %v23_v0  ;;  %v28_v3 = vadd.f32 3.0, %v24_v1  ;;  %s104_s24 = smov [#allocation7]  }
  0x14   :  { %v33_v6 = vstv %s26_s23  ;;  %s44_s25 = sshll.u32 %s104_s24, 4  ;;  %s45_s25 = int_to_ptr.vmem [resolvable:$true] %s44_s25 }
  0x15   :  { %v29_v4 = vmax.f32 %v27_v2, 0.0  ;;  %v30_v5 = vmax.f32 %v28_v3, 0.0  ;;  %s77_s1 = scalar_lea.vmem %s45_s25, 256  ;;  %p82_p9 = scmp.lt.s32.totalorder %s45_s25, %s45_s25 }
  0x16   :  { %p78_p8 = scmp.ne.s32.totalorder %s45_s25, %s77_s1  ;;  %p83_p10 = scmp.lt.s32.totalorder %s77_s1, %s77_s1 }
  0x17   :  { %v31_v7 = vmin.f32 %v29_v4, 6.0  ;;  %v32_v8 = vmin.f32 %v30_v5, 6.0 }
  0x18   :  { %p84_p11 = por %p83_p10, %p82_p9 }
  0x19   :  { %v34_v9 = vmul.f32 %v33_v6, %v31_v7  ;;  %v35_v10 = vmul.f32 %v33_v6, %v32_v8 }
  0x1a   :  { %p85_p12 = pnand %p84_p11, %p78_p8 }
  0x1b   :  { %36 = vst [vmem:[#allocation7] sm:$0xff] %v34_v9  ;;  %37 = vst [vmem:[#allocation7 + $0x8] sm:$0xff] %v35_v10 }
  0x1c   :  { %88 = shalt.err (!%p85_p12)
}
  0x1d   :  { %s89_s27 = scalar_lea.hbm %s149_s2, 256 }
  0x1e   :  { %p90_p13 = scmp.ne.s32.totalorder %s149_s2, %s89_s27  ;;  %p93_p0 = scmp.lt.u32.totalorder %s89_s27, %s149_s2 }
  0x20   :  { %p95_p1 = pnand %p93_p0, %p90_p13 }
  0x22   :  { %98 = shalt.err (!%p95_p1)
}
  0x23   :  { %47 = dma.vmem_to_hbm [thread:$0]  %s45_s25, 256, %s149_s2, [#allocation6]  }
  0x24   :  { %101 = dma.done.wait [#allocation6], 256  }
  0x25   :  { %102 = vsyncadd [#allocation6], 4294967040 }
  0x26   :  { %51 = vsyncpa [#allocation5], 1 }
  0x27   :  { %52 = vsyncpa [#allocation6], 1 }

</bundles_post_ra>
